<compile_context>
chip_gen: v5e
topology: v5e:2x2
jax: 0.10.0
libtpu: 0.0.40
codegen_flags: <defaults>
</compile_context>

<pallas_src>
import math

import jax
import jax.numpy as jnp
from jax.experimental import pallas as pl
from jax.experimental.pallas import tpu as pltpu


# ----------------------------------------------------------------------------
# Parameter init (mirrors torch: xavier_uniform_ weights, zero biases)
# ----------------------------------------------------------------------------
def _xavier_uniform(key, out_dim, in_dim):
    a = math.sqrt(6.0 / (in_dim + out_dim))
    return jax.random.uniform(key, (out_dim, in_dim), jnp.float32, minval=-a, maxval=a)


def init_write_unit_params(key, dim, self_attention=False, memory_gate=False):
    k_concat, k_attn, k_mem, k_ctrl = jax.random.split(key, 4)
    params = {
        "concat_w": _xavier_uniform(k_concat, dim, dim * 2),   # (dim, 2*dim)
        "concat_b": jnp.zeros((dim,), jnp.float32),
    }
    if self_attention:
        params["attn_w"] = _xavier_uniform(k_attn, 1, dim)
        params["attn_b"] = jnp.zeros((1,), jnp.float32)
        params["mem_w"] = _xavier_uniform(k_mem, dim, dim)
        params["mem_b"] = jnp.zeros((dim,), jnp.float32)
    if memory_gate:
        params["control_w"] = _xavier_uniform(k_ctrl, 1, dim)  # (1, dim)
        params["control_b"] = jnp.zeros((1,), jnp.float32)
    return params


# ----------------------------------------------------------------------------
# Host-side, once-per-model weight preparation
# ----------------------------------------------------------------------------
def _round_up(x, m):
    return ((x + m - 1) // m) * m


def prepare_write_unit_weights(params, dim, compute_dtype=jnp.bfloat16):
    """Split / transpose / lane-pad / bf16-cast the WriteUnit weights ONCE."""
    d_pad = _round_up(dim, 128)
    pad2 = ((0, d_pad - dim), (0, d_pad - dim))
    w = params["concat_w"]                                     # (dim, 2*dim)
    prepped = {
        "dim": dim,
        "dim_pad": d_pad,
        "wr_t": jnp.pad(jnp.transpose(w[:, :dim]), pad2).astype(compute_dtype),
        "wm_t": jnp.pad(jnp.transpose(w[:, dim:]), pad2).astype(compute_dtype),
        # bias / gate params are tiny: keep them in f32 (the accumulation dtype).
        "bias": jnp.pad(params["concat_b"], (0, d_pad - dim))
                  .reshape(1, d_pad).astype(jnp.float32),
    }
    if "control_w" in params:
        prepped["wg"] = jnp.pad(params["control_w"].reshape(1, dim),
                                ((0, 0), (0, d_pad - dim))).astype(jnp.float32)
        prepped["bg"] = params["control_b"].reshape(1, 1).astype(jnp.float32)
    return prepped


# ----------------------------------------------------------------------------
# Pallas kernels
# ----------------------------------------------------------------------------
def _write_unit_kernel(r_ref, m_ref, wr_ref, wm_ref, b_ref, o_ref):
    # next_mem = retrieved @ Wr^T + prev_mem @ Wm^T + b  (== Linear(cat([r, m])))
    acc = jnp.dot(r_ref[...], wr_ref[...], preferred_element_type=jnp.float32)
    acc = acc + jnp.dot(m_ref[...], wm_ref[...], preferred_element_type=jnp.float32)
    o_ref[...] = (acc + b_ref[...]).astype(o_ref.dtype)


def _write_unit_gate_kernel(r_ref, m_ref, c_ref, wr_ref, wm_ref, b_ref,
                            wg_ref, bg_ref, o_ref):
    concat = jnp.dot(r_ref[...], wr_ref[...], preferred_element_type=jnp.float32)
    concat = concat + jnp.dot(m_ref[...], wm_ref[...], preferred_element_type=jnp.float32)
    concat = concat + b_ref[...]
    # gate = sigmoid(controls[-1] @ Wg^T + bg); Wg is (1, dim) -> lane reduce.
    gate_logit = jnp.sum(c_ref[...].astype(jnp.float32) * wg_ref[...],
                         axis=-1, keepdims=True) + bg_ref[...]
    gate = jax.nn.sigmoid(gate_logit)                            # (tb, 1)
    prev = m_ref[...].astype(jnp.float32)
    # gate*prev + (1-gate)*concat written as concat + gate*(prev - concat):
    # saves one full (tb, D) VPU multiply.
    o_ref[...] = (concat + gate * (prev - concat)).astype(o_ref.dtype)


# ----------------------------------------------------------------------------
# Batch tiling
# ----------------------------------------------------------------------------
def _choose_batch_tile(B, *, sublane=16, max_tb=512, pref_tb=256, target_tiles=8):
    """>=2 tiles whenever B permits (DMA/compute overlap + v7x 2nd TensorCore),
    ~256-512 rows per tile for MXU fill, tile a multiple of 16 (bf16 packing)."""
    if B < 2 * sublane:
        return B                      # one tile == full array dim (always legal)
    n_tiles = max(2, min(target_tiles, pl.cdiv(B, pref_tb)))
    tb = _round_up(pl.cdiv(B, n_tiles), sublane)
    return min(tb, max_tb)


# ----------------------------------------------------------------------------
# Wrapper
# ----------------------------------------------------------------------------
def write_unit_forward(weights, memories, retrieved, controls=None,
                       self_attention=False, memory_gate=False,
                       out_dtype=None, max_block_b=512):
    """Pallas implementation of WriteUnit.forward.

    `weights` is preferably the output of prepare_write_unit_weights() (so the
    weight split/transpose/pad/cast is paid once); the raw params dict is also
    accepted and prepped on the fly. memories / controls are python lists of
    (batch, dim) arrays, as in PyTorch.
    """
    if self_attention:
        # TODO(synk): self_attention branch (softmax attention over the stack of
        # previous MAC steps) is not implemented as a Pallas kernel.
        raise NotImplementedError("WriteUnit self_attention branch not implemented")

    B, D = retrieved.shape
    if "wr_t" not in weights:          # raw torch-style params: prep per call
        weights = prepare_write_unit_weights(weights, D)

    compute_dtype = weights["wr_t"].dtype
    d_pad = weights["dim_pad"]
    out_dtype = retrieved.dtype if out_dtype is None else out_dtype
    prev_mem = memories[-1]

    def _prep_rows(x):
        # bf16-cast + lane-pad the streamed (batch, dim) operands. If the caller
        # already produces bf16 / 128-aligned activations, these are no-ops.
        x = x.astype(compute_dtype)
        if d_pad != D:
            x = jnp.pad(x, ((0, 0), (0, d_pad - D)))
        return x

    r = _prep_rows(retrieved)
    m = _prep_rows(prev_mem)
    ctrl = _prep_rows(controls[-1]) if memory_gate else None

    tb = _choose_batch_tile(B, max_tb=max_block_b)
    grid = (pl.cdiv(B, tb),)

    row_spec = pl.BlockSpec((tb, d_pad), lambda i: (i, 0))      # batch-tiled streams
    out_spec = pl.BlockSpec((tb, d_pad), lambda i: (i, 0))      # lane-dense output

    # Roofline hint for XLA's scheduler + explicit VMEM budget (v7x: 64 MiB).
    in_item = jnp.dtype(compute_dtype).itemsize
    out_item = jnp.dtype(out_dtype).itemsize
    n_streams = 3 if memory_gate else 2
    cost = pl.CostEstimate(
        flops=4 * B * d_pad * d_pad + (8 * B * d_pad if memory_gate else 0),
        transcendentals=B if memory_gate else 0,
        bytes_accessed=(n_streams * B * d_pad * in_item
                        + 2 * d_pad * d_pad * in_item
                        + B * d_pad * out_item))
    vmem_bytes = (2 * n_streams * tb * d_pad * in_item     # double-buffered inputs
                  + 2 * d_pad * d_pad * in_item            # resident weights
                  + 2 * tb * d_pad * out_item              # double-buffered output
                  + 2 * tb * d_pad * 4)                    # f32 accumulator headroom
    cparams = pltpu.CompilerParams(
        dimension_semantics=("parallel",),
        vmem_limit_bytes=int(min(max(2 * vmem_bytes, 32 << 20), 64 << 20)))

    out_shape = jax.ShapeDtypeStruct((B, d_pad), out_dtype)

    def _invoke(const_pipeline_mode):
        # Constant-index operands (weights / biases) stay resident in VMEM across
        # batch tiles; Buffered(1) avoids allocating a useless second buffer.
        wgt_spec = pl.BlockSpec((d_pad, d_pad), lambda i: (0, 0),
                                pipeline_mode=const_pipeline_mode)
        vec_spec = pl.BlockSpec((1, d_pad), lambda i: (0, 0),
                                pipeline_mode=const_pipeline_mode)
        scl_spec = pl.BlockSpec((1, 1), lambda i: (0, 0),
                                pipeline_mode=const_pipeline_mode)
        if memory_gate:
            kernel = _write_unit_gate_kernel
            in_specs = [row_spec, row_spec, row_spec,
                        wgt_spec, wgt_spec, vec_spec, vec_spec, scl_spec]
            args = (r, m, ctrl, weights["wr_t"], weights["wm_t"],
                    weights["bias"], weights["wg"], weights["bg"])
        else:
            kernel = _write_unit_kernel
            in_specs = [row_spec, row_spec, wgt_spec, wgt_spec, vec_spec]
            args = (r, m, weights["wr_t"], weights["wm_t"], weights["bias"])
        return pl.pallas_call(
            kernel,
            out_shape=out_shape,
            grid=grid,
            in_specs=in_specs,
            out_specs=out_spec,
            compiler_params=cparams,
            cost_estimate=cost,
        )(*args)

    try:
        out = _invoke(pl.Buffered(1))
    except Exception:   # fall back if this jax build rejects single-buffering
        out = _invoke(None)

    return out[:, :D] if d_pad != D else out


# ----------------------------------------------------------------------------
# Pure-JAX reference (mirrors the PyTorch forward)
# ----------------------------------------------------------------------------
def write_unit_reference(params, memories, retrieved, controls,
                         self_attention=False, memory_gate=False):
    prev_mem = memories[-1]
    x = jnp.concatenate([retrieved, prev_mem], axis=1)
    next_mem = x @ params["concat_w"].T + params["concat_b"]
    if memory_gate:
        gate = jax.nn.sigmoid(controls[-1] @ params["control_w"].T + params["control_b"])
        next_mem = gate * prev_mem + (1.0 - gate) * next_mem
    return next_mem


if __name__ == "__main__":
    root_key = jax.random.PRNGKey(0)

    def run_case(batch, dim, n_steps):
        ks = jax.random.split(jax.random.fold_in(root_key, batch * 1000 + dim),
                              2 + 2 * n_steps)
        params = init_write_unit_params(ks[0], dim, memory_gate=True)
        memories = [jax.random.normal(ks[1 + i], (batch, dim), jnp.float32)
                    for i in range(n_steps)]
        controls = [jax.random.normal(ks[1 + n_steps + i], (batch, dim), jnp.float32)
                    for i in range(n_steps)]
        retrieved = jax.random.normal(ks[1 + 2 * n_steps], (batch, dim), jnp.float32)

        prepped = prepare_write_unit_weights(params, dim)   # once per model

        # Default WriteUnit config (self_attention=False, memory_gate=False).
        out = jax.block_until_ready(
            write_unit_forward(prepped, memories, retrieved, controls))
        ref = write_unit_reference(params, memories, retrieved, controls)
        assert out.shape == (batch, dim)
        # Tolerance covers the bf16 streaming / MXU bf16 accumulation path.
        assert jnp.allclose(out, ref, rtol=3e-2, atol=3e-2), \
            f"mismatch vs reference (base path, B={batch}, D={dim})"

        # Fused memory_gate variant.
        out_g = jax.block_until_ready(
            write_unit_forward(prepped, memories, retrieved, controls, memory_gate=True))
        ref_g = write_unit_reference(params, memories, retrieved, controls, memory_gate=True)
        assert jnp.allclose(out_g, ref_g, rtol=3e-2, atol=3e-2), \
            f"mismatch vs reference (gated path, B={batch}, D={dim})"

    # Small shape: dim=32 exercises the lane-pad-to-128 path, single batch tile.
    run_case(batch=2, dim=32, n_steps=3)
    # 128-aligned dim with a multi-tile batch grid (2 tiles incl. a masked tail).
    run_case(batch=48, dim=128, n_steps=3)

    print("KERNEL_OK")
</pallas_src>

<mosaic_0001>
module attributes {stable_mosaic.version = 11 : i64} {
  func.func @_write_unit_kernel(%arg0: i32, %arg1: memref<2x128xbf16, #tpu.memory_space<vmem>>, %arg2: memref<2x128xbf16, #tpu.memory_space<vmem>>, %arg3: memref<128x128xbf16, #tpu.memory_space<vmem>>, %arg4: memref<128x128xbf16, #tpu.memory_space<vmem>>, %arg5: memref<1x128xf32, #tpu.memory_space<vmem>>, %arg6: memref<2x128xf32, #tpu.memory_space<vmem>>) attributes {dimension_semantics = [#tpu.dimension_semantics<parallel>], iteration_bounds = array<i64: 1>, scalar_prefetch = 0 : i64, scratch_operands = 0 : i64, tpu.core_type = #tpu.core_type<tc>, window_params = [{transform_indices = @transform_0, window_bounds = array<i64: 2, 128>}, {transform_indices = @transform_1, window_bounds = array<i64: 2, 128>}, {pipeline_mode = #tpu.pipeline_mode<synchronous>, transform_indices = @transform_2, window_bounds = array<i64: 128, 128>}, {pipeline_mode = #tpu.pipeline_mode<synchronous>, transform_indices = @transform_3, window_bounds = array<i64: 128, 128>}, {pipeline_mode = #tpu.pipeline_mode<synchronous>, transform_indices = @transform_4, window_bounds = array<i64: 1, 128>}, {transform_indices = @transform_5, window_bounds = array<i64: 2, 128>}]} {
    %c0 = arith.constant 0 : index
    %c0_0 = arith.constant 0 : index
    %0 = vector.load %arg1[%c0, %c0_0] : memref<2x128xbf16, #tpu.memory_space<vmem>>, vector<2x128xbf16>
    %c0_1 = arith.constant 0 : index
    %c0_2 = arith.constant 0 : index
    %1 = vector.load %arg3[%c0_1, %c0_2] : memref<128x128xbf16, #tpu.memory_space<vmem>>, vector<128x128xbf16>
    %cst = arith.constant dense<0.000000e+00> : vector<2x128xf32>
    %2 = tpu.matmul %0, %1, %cst {dimension_numbers = #tpu.dot_dimension_numbers<[1], [0], [0], [1], [0, 0, 1, 1], [], []>} : vector<2x128xbf16>, vector<128x128xbf16>, vector<2x128xf32> -> vector<2x128xf32>
    %c0_3 = arith.constant 0 : index
    %c0_4 = arith.constant 0 : index
    %3 = vector.load %arg2[%c0_3, %c0_4] : memref<2x128xbf16, #tpu.memory_space<vmem>>, vector<2x128xbf16>
    %c0_5 = arith.constant 0 : index
    %c0_6 = arith.constant 0 : index
    %4 = vector.load %arg4[%c0_5, %c0_6] : memref<128x128xbf16, #tpu.memory_space<vmem>>, vector<128x128xbf16>
    %cst_7 = arith.constant dense<0.000000e+00> : vector<2x128xf32>
    %5 = tpu.matmul %3, %4, %cst_7 {dimension_numbers = #tpu.dot_dimension_numbers<[1], [0], [0], [1], [0, 0, 1, 1], [], []>} : vector<2x128xbf16>, vector<128x128xbf16>, vector<2x128xf32> -> vector<2x128xf32>
    %6 = arith.addf %2, %5 : vector<2x128xf32>
    %c0_8 = arith.constant 0 : index
    %c0_9 = arith.constant 0 : index
    %7 = vector.load %arg5[%c0_8, %c0_9] : memref<1x128xf32, #tpu.memory_space<vmem>>, vector<1x128xf32>
    %8 = vector.broadcast %7 : vector<1x128xf32> to vector<2x128xf32>
    %9 = arith.addf %6, %8 : vector<2x128xf32>
    %c0_10 = arith.constant 0 : index
    %c0_11 = arith.constant 0 : index
    %10 = vector.load %arg6[%c0_10, %c0_11] : memref<2x128xf32, #tpu.memory_space<vmem>>, vector<2x128xf32>
    tpu.vector_store %arg6[%c0_10, %c0_11], %9 {strides = array<i32>} : memref<2x128xf32, #tpu.memory_space<vmem>>, vector<2x128xf32>,
    return
  }
  func.func @transform_0(%arg0: i32) -> (i32, i32) {
    %c0_i32 = arith.constant 0 : i32
    %c0_i32_0 = arith.constant 0 : i32
    return %arg0, %c0_i32 : i32, i32
  }
  func.func @transform_1(%arg0: i32) -> (i32, i32) {
    %c0_i32 = arith.constant 0 : i32
    %c0_i32_0 = arith.constant 0 : i32
    return %arg0, %c0_i32 : i32, i32
  }
  func.func @transform_2(%arg0: i32) -> (i32, i32) {
    %c0_i32 = arith.constant 0 : i32
    %c0_i32_0 = arith.constant 0 : i32
    %c0_i32_1 = arith.constant 0 : i32
    return %c0_i32, %c0_i32_0 : i32, i32
  }
  func.func @transform_3(%arg0: i32) -> (i32, i32) {
    %c0_i32 = arith.constant 0 : i32
    %c0_i32_0 = arith.constant 0 : i32
    %c0_i32_1 = arith.constant 0 : i32
    return %c0_i32, %c0_i32_0 : i32, i32
  }
  func.func @transform_4(%arg0: i32) -> (i32, i32) {
    %c0_i32 = arith.constant 0 : i32
    %c0_i32_0 = arith.constant 0 : i32
    %c0_i32_1 = arith.constant 0 : i32
    return %c0_i32, %c0_i32_0 : i32, i32
  }
  func.func @transform_5(%arg0: i32) -> (i32, i32) {
    %c0_i32 = arith.constant 0 : i32
    %c0_i32_0 = arith.constant 0 : i32
    return %arg0, %c0_i32 : i32, i32
  }
}

module attributes {stable_mosaic.version = 11 : i64} {
  func.func @_write_unit_kernel(%arg0: i32, %arg1: memref<2x128xbf16, #tpu.memory_space<vmem>>, %arg2: memref<2x128xbf16, #tpu.memory_space<vmem>>, %arg3: memref<128x128xbf16, #tpu.memory_space<vmem>>, %arg4: memref<128x128xbf16, #tpu.memory_space<vmem>>, %arg5: memref<1x128xf32, #tpu.memory_space<vmem>>, %arg6: memref<2x128xf32, #tpu.memory_space<vmem>>) attributes {dimension_semantics = [#tpu.dimension_semantics<parallel>], iteration_bounds = array<i64: 1>, scalar_prefetch = 0 : i64, scratch_operands = 0 : i64, tpu.core_type = #tpu.core_type<tc>, window_params = [{transform_indices = @transform_0, window_bounds = array<i64: 2, 128>}, {transform_indices = @transform_1, window_bounds = array<i64: 2, 128>}, {pipeline_mode = #tpu.pipeline_mode<synchronous>, transform_indices = @transform_2, window_bounds = array<i64: 128, 128>}, {pipeline_mode = #tpu.pipeline_mode<synchronous>, transform_indices = @transform_3, window_bounds = array<i64: 128, 128>}, {pipeline_mode = #tpu.pipeline_mode<synchronous>, transform_indices = @transform_4, window_bounds = array<i64: 1, 128>}, {transform_indices = @transform_5, window_bounds = array<i64: 2, 128>}]} {
    %c0 = arith.constant 0 : index
    %c0_0 = arith.constant 0 : index
    %0 = vector.load %arg1[%c0, %c0_0] : memref<2x128xbf16, #tpu.memory_space<vmem>>, vector<2x128xbf16>
    %c0_1 = arith.constant 0 : index
    %c0_2 = arith.constant 0 : index
    %1 = vector.load %arg3[%c0_1, %c0_2] : memref<128x128xbf16, #tpu.memory_space<vmem>>, vector<128x128xbf16>
    %cst = arith.constant dense<0.000000e+00> : vector<2x128xf32>
    %2 = tpu.matmul %0, %1, %cst {dimension_numbers = #tpu.dot_dimension_numbers<[1], [0], [0], [1], [0, 0, 1, 1], [], []>} : vector<2x128xbf16>, vector<128x128xbf16>, vector<2x128xf32> -> vector<2x128xf32>
    %c0_3 = arith.constant 0 : index
    %c0_4 = arith.constant 0 : index
    %3 = vector.load %arg2[%c0_3, %c0_4] : memref<2x128xbf16, #tpu.memory_space<vmem>>, vector<2x128xbf16>
    %c0_5 = arith.constant 0 : index
    %c0_6 = arith.constant 0 : index
    %4 = vector.load %arg4[%c0_5, %c0_6] : memref<128x128xbf16, #tpu.memory_space<vmem>>, vector<128x128xbf16>
    %cst_7 = arith.constant dense<0.000000e+00> : vector<2x128xf32>
    %5 = tpu.matmul %3, %4, %cst_7 {dimension_numbers = #tpu.dot_dimension_numbers<[1], [0], [0], [1], [0, 0, 1, 1], [], []>} : vector<2x128xbf16>, vector<128x128xbf16>, vector<2x128xf32> -> vector<2x128xf32>
    %6 = arith.addf %2, %5 : vector<2x128xf32>
    %c0_8 = arith.constant 0 : index
    %c0_9 = arith.constant 0 : index
    %7 = vector.load %arg5[%c0_8, %c0_9] : memref<1x128xf32, #tpu.memory_space<vmem>>, vector<1x128xf32>
    %8 = vector.broadcast %7 : vector<1x128xf32> to vector<2x128xf32>
    %9 = arith.addf %6, %8 : vector<2x128xf32>
    %c0_10 = arith.constant 0 : index
    %c0_11 = arith.constant 0 : index
    %10 = vector.load %arg6[%c0_10, %c0_11] : memref<2x128xf32, #tpu.memory_space<vmem>>, vector<2x128xf32>
    tpu.vector_store %arg6[%c0_10, %c0_11], %9 {strides = array<i32>} : memref<2x128xf32, #tpu.memory_space<vmem>>, vector<2x128xf32>,
    return
  }
  func.func @transform_0(%arg0: i32) -> (i32, i32) {
    %c0_i32 = arith.constant 0 : i32
    %c0_i32_0 = arith.constant 0 : i32
    return %arg0, %c0_i32 : i32, i32
  }
  func.func @transform_1(%arg0: i32) -> (i32, i32) {
    %c0_i32 = arith.constant 0 : i32
    %c0_i32_0 = arith.constant 0 : i32
    return %arg0, %c0_i32 : i32, i32
  }
  func.func @transform_2(%arg0: i32) -> (i32, i32) {
    %c0_i32 = arith.constant 0 : i32
    %c0_i32_0 = arith.constant 0 : i32
    %c0_i32_1 = arith.constant 0 : i32
    return %c0_i32, %c0_i32_0 : i32, i32
  }
  func.func @transform_3(%arg0: i32) -> (i32, i32) {
    %c0_i32 = arith.constant 0 : i32
    %c0_i32_0 = arith.constant 0 : i32
    %c0_i32_1 = arith.constant 0 : i32
    return %c0_i32, %c0_i32_0 : i32, i32
  }
  func.func @transform_4(%arg0: i32) -> (i32, i32) {
    %c0_i32 = arith.constant 0 : i32
    %c0_i32_0 = arith.constant 0 : i32
    %c0_i32_1 = arith.constant 0 : i32
    return %c0_i32, %c0_i32_0 : i32, i32
  }
  func.func @transform_5(%arg0: i32) -> (i32, i32) {
    %c0_i32 = arith.constant 0 : i32
    %c0_i32_0 = arith.constant 0 : i32
    return %arg0, %c0_i32 : i32, i32
  }
}

</mosaic_0001>

<bundles_post_ra>
// kernel: tpu_custom_call.1
= control target key start
LH: loop header
LB: loop body
LE: loop exit
PB: predicated region body
PF: predicated region fallthrough
CT: control target
= control target key end

     0   :  { %10 = vsyncpa [#allocation3], 0  ;;  %s532_s0 = inlined_call_operand.hbm [shape: bf16[2,128], index: 0, kind: input, shape index: {}]   ;;  %s533_s1 = inlined_call_operand.hbm [shape: bf16[2,128], index: 1, kind: input, shape index: {}]   ;;  %s534_s2 = inlined_call_operand.hbm [shape: bf16[128,128], index: 2, kind: input, shape index: {}]   ;;  %s535_s3 = inlined_call_operand.hbm [shape: bf16[128,128], index: 3, kind: input, shape index: {}]   ;;  %s536_s4 = inlined_call_operand.vmem [shape: f32[1,128], index: 4, kind: input, shape index: {}]   ;;  %s537_s5 = inlined_call_operand.hbm [shape: f32[2,128], index: 5, kind: output, shape index: {}]  }
   0x1   :  { %11 = vsyncpa [#allocation6], 0 }
   0x2   :  { %12 = vsyncpa [#allocation9], 0  ;;  %s30_s20 = sshll.u32 %s533_s1, 4  ;;  %s31_s20 = int_to_ptr.hbm [resolvable:$true] %s30_s20 }
   0x3   :  { %13 = vsyncpa [#allocation4], 0  ;;  %s477_s21 = smov [#allocation5]   ;;  %s19_s25 = sshll.u32 %s532_s0, 4  ;;  %s20_s25 = int_to_ptr.hbm [resolvable:$true] %s19_s25 }
   0x4   :  { %s32_s22 = sshll.u32 %s477_s21, 4  ;;  %s478_s26 = smov [#allocation2]   ;;  %s33_s22 = int_to_ptr.vmem [resolvable:$true] %s32_s22 }
   0x5   :  { %35 = dma.hbm_to_vmem [thread:$0]  %s31_s20, 16, %s33_s22, [#allocation6]  }
   0x6   :  { %s21_s27 = sshll.u32 %s478_s26, 4  ;;  %s40_s30 = sshll.u32 %s534_s2, 4  ;;  %s22_s27 = int_to_ptr.vmem [resolvable:$true] %s21_s27  ;;  %s41_s30 = int_to_ptr.hbm [resolvable:$true] %s40_s30 }
   0x7   :  { %24 = dma.hbm_to_vmem [thread:$0]  %s20_s25, 16, %s22_s27, [#allocation3]  }
   0x8   :  { %s479_s1 = smov [#allocation7]   ;;  %s53_s9 = sshll.u32 %s535_s3, 4  ;;  %s54_s9 = int_to_ptr.hbm [resolvable:$true] %s53_s9 }
   0x9   :  { %s42_s6 = sshll.u32 %s479_s1, 4  ;;  %s480_s10 = smov 64   ;;  %s43_s6 = int_to_ptr.vmem [resolvable:$true] %s42_s6 }
   0xa   :  { %s481_s0 = smov 4   ;;  %s482_s11 = smov [#allocation8]  }
   0xb   :  { %48 = dma.hbm_to_vmem [thread:$0]  %s41_s30, 1024, %s43_s6, [#allocation6], %s480_s10, %s480_s10, %s481_s0  }
   0xc   :  { %s55_s12 = sshll.u32 %s482_s11, 4  ;;  %s56_s12 = int_to_ptr.vmem [resolvable:$true] %s55_s12 }
   0xd   :  { %61 = dma.hbm_to_vmem [thread:$0]  %s54_s9, 1024, %s56_s12, [#allocation9], %s480_s10, %s480_s10, %s481_s0  }
   0xe   :  { %469 = dma.done.wait [#allocation3], 16  }
   0xf   :  { %470 = vsyncadd [#allocation3], 4294967280 }
  0x10   :  { %471 = dma.done.wait [#allocation6], 1040  }
  0x11   :  { %472 = vsyncadd [#allocation6], 4294966256 }
  0x12   :  { %473 = dma.done.wait [#allocation9], 1024  }
  0x13   :  { %474 = vsyncadd [#allocation9], 4294966272  ;;  %v340_v0 = vld [vmem:[#allocation8 + $0x38] sm:$0xff]  ;;  %v339_v2 = vld [vmem:[#allocation8 + $0x30] sm:$0xff]  ;;  %s483_s13 = smov [#allocation10]   ;;  %s249_s17 = sshll.u32 %s537_s5, 4  ;;  %s250_s17 = int_to_ptr.hbm [resolvable:$true] %s249_s17 }
  0x14   :  { %v332_v1 = vld [vmem:[#allocation7 + $0x38] sm:$0xff]  ;;  %162 = vmatpush.bf16.msra.mxu0 %v340_v0  ;;  %v331_v3 = vld [vmem:[#allocation7 + $0x30] sm:$0xff]  ;;  %v338_v4 = vld [vmem:[#allocation8 + $0x28] sm:$0xff]  ;;  %s247_s14 = sshll.u32 %s483_s13, 4  ;;  %s248_s14 = int_to_ptr.vmem [resolvable:$true] %s247_s14 }
  0x15   :  { %223 = vmatpush.bf16.msra.mxu1 %v332_v1  ;;  %v330_v5 = vld [vmem:[#allocation7 + $0x28] sm:$0xff]  ;;  %v337_v6 = vld [vmem:[#allocation8 + $0x20] sm:$0xff]  ;;  %v336_v8 = vld [vmem:[#allocation8 + $0x18] sm:$0xff] }
  0x16   :  { %v329_v7 = vld [vmem:[#allocation7 + $0x20] sm:$0xff]  ;;  %v328_v9 = vld [vmem:[#allocation7 + $0x18] sm:$0xff]  ;;  %v335_v10 = vld [vmem:[#allocation8 + $0x10] sm:$0xff] }
  0x17   :  { %v327_v11 = vld [vmem:[#allocation7 + $0x10] sm:$0xff]  ;;  %v334_v12 = vld [vmem:[#allocation8 + $0x8] sm:$0xff]  ;;  %v333_v14 = vld [vmem:[#allocation8] sm:$0xff] }
  0x18   :  { %163 = vmatpush.bf16.msra.mxu0 %v339_v2  ;;  %v326_v13 = vld [vmem:[#allocation7 + $0x8] sm:$0xff]  ;;  %v325_v15 = vld [vmem:[#allocation7] sm:$0xff]  ;;  %v97_v16 = vld [vmem:[#allocation5] sm:$0x1] }
  0x19   :  { %224 = vmatpush.bf16.msra.mxu1 %v331_v3  ;;  %v80_v17 = vld [vmem:[#allocation2] sm:$0x1] }
  0x1a   :  { %v348_v18 = vld [vmem:[%s536_s4] ss:$0 sm:$0xff] }
  0x1c   :  { %164 = vmatpush.bf16.msra.mxu0 %v338_v4 }
  0x1d   :  { %225 = vmatpush.bf16.msra.mxu1 %v330_v5 }
  0x20   :  { %165 = vmatpush.bf16.msra.mxu0 %v337_v6 }
  0x21   :  { %226 = vmatpush.bf16.msra.mxu1 %v329_v7 }
  0x24   :  { %166 = vmatpush.bf16.msra.mxu0 %v336_v8 }
  0x25   :  { %227 = vmatpush.bf16.msra.mxu1 %v328_v9 }
  0x28   :  { %167 = vmatpush.bf16.msra.mxu0 %v335_v10 }
  0x29   :  { %228 = vmatpush.bf16.msra.mxu1 %v327_v11 }
  0x2c   :  { %168 = vmatpush.bf16.msra.mxu0 %v334_v12 }
  0x2d   :  { %229 = vmatpush.bf16.msra.mxu1 %v326_v13 }
  0x30   :  { %169 = vmatpush.bf16.msra.mxu0 %v333_v14 }
  0x31   :  { %230 = vmatpush.bf16.msra.mxu1 %v325_v15 }
  0x33   :  { %170 = vmatmul.bf16.vlgmr.msra.gmra.mxu0 %v97_v16 }
  0x34   :  { %231 = vmatmul.bf16.vlgmr.msra.gmra.mxu1 %v80_v17 }
  0xb0   :  { %v171_v19 = vpop.f32.mrf.mxu0 }
  0xb1   :  { %v232_v20 = vpop.f32.mrf.mxu1 }
  0xb2   :  { %v233_v21 = vadd.f32 %v232_v20, %v171_v19 }
  0xb4   :  { %v240_v22 = vadd.f32 %v348_v18, %v233_v21 }
  0xb6   :  { %241 = vst [vmem:[#allocation10] sm:$0x3] %v240_v22 }
  0xb7   :  { %252 = dma.vmem_to_hbm [thread:$0]  %s248_s14, 32, %s250_s17, [#allocation4]  }
  0xb8   :  { %v173_v23 = vpop.f32.mrf.mxu0 }
  0xb9   :  { %v234_v24 = vpop.f32.mrf.mxu1 }
  0xba   :  { %475 = dma.done.wait [#allocation4], 32  }
  0xbb   :  { %476 = vsyncadd [#allocation4], 4294967264 }
  0xbc   :  { %257 = vsyncpa [#allocation3], 1 }
  0xbd   :  { %258 = vsyncpa [#allocation6], 1 }
  0xbe   :  { %259 = vsyncpa [#allocation9], 1 }
  0xbf   :  { %260 = vsyncpa [#allocation4], 1 }

// kernel: tpu_custom_call.1
= control target key start
LH: loop header
LB: loop body
LE: loop exit
PB: predicated region body
PF: predicated region fallthrough
CT: control target
= control target key end

     0   :  { %10 = vsyncpa [#allocation3], 0  ;;  %s532_s0 = inlined_call_operand.hbm [shape: bf16[2,128], index: 0, kind: input, shape index: {}]   ;;  %s533_s1 = inlined_call_operand.hbm [shape: bf16[2,128], index: 1, kind: input, shape index: {}]   ;;  %s534_s2 = inlined_call_operand.hbm [shape: bf16[128,128], index: 2, kind: input, shape index: {}]   ;;  %s535_s3 = inlined_call_operand.hbm [shape: bf16[128,128], index: 3, kind: input, shape index: {}]   ;;  %s536_s4 = inlined_call_operand.vmem [shape: f32[1,128], index: 4, kind: input, shape index: {}]   ;;  %s537_s5 = inlined_call_operand.hbm [shape: f32[2,128], index: 5, kind: output, shape index: {}]  }
   0x1   :  { %11 = vsyncpa [#allocation6], 0 }
   0x2   :  { %12 = vsyncpa [#allocation9], 0  ;;  %s30_s20 = sshll.u32 %s533_s1, 4  ;;  %s31_s20 = int_to_ptr.hbm [resolvable:$true] %s30_s20 }
   0x3   :  { %13 = vsyncpa [#allocation4], 0  ;;  %s477_s21 = smov [#allocation5]   ;;  %s19_s25 = sshll.u32 %s532_s0, 4  ;;  %s20_s25 = int_to_ptr.hbm [resolvable:$true] %s19_s25 }
   0x4   :  { %s32_s22 = sshll.u32 %s477_s21, 4  ;;  %s478_s26 = smov [#allocation2]   ;;  %s33_s22 = int_to_ptr.vmem [resolvable:$true] %s32_s22 }
   0x5   :  { %35 = dma.hbm_to_vmem [thread:$0]  %s31_s20, 16, %s33_s22, [#allocation6]  }
   0x6   :  { %s21_s27 = sshll.u32 %s478_s26, 4  ;;  %s40_s30 = sshll.u32 %s534_s2, 4  ;;  %s22_s27 = int_to_ptr.vmem [resolvable:$true] %s21_s27  ;;  %s41_s30 = int_to_ptr.hbm [resolvable:$true] %s40_s30 }
   0x7   :  { %24 = dma.hbm_to_vmem [thread:$0]  %s20_s25, 16, %s22_s27, [#allocation3]  }
   0x8   :  { %s479_s1 = smov [#allocation7]   ;;  %s53_s9 = sshll.u32 %s535_s3, 4  ;;  %s54_s9 = int_to_ptr.hbm [resolvable:$true] %s53_s9 }
   0x9   :  { %s42_s6 = sshll.u32 %s479_s1, 4  ;;  %s480_s10 = smov 64   ;;  %s43_s6 = int_to_ptr.vmem [resolvable:$true] %s42_s6 }
   0xa   :  { %s481_s0 = smov 4   ;;  %s482_s11 = smov [#allocation8]  }
   0xb   :  { %48 = dma.hbm_to_vmem [thread:$0]  %s41_s30, 1024, %s43_s6, [#allocation6], %s480_s10, %s480_s10, %s481_s0  }
   0xc   :  { %s55_s12 = sshll.u32 %s482_s11, 4  ;;  %s56_s12 = int_to_ptr.vmem [resolvable:$true] %s55_s12 }
   0xd   :  { %61 = dma.hbm_to_vmem [thread:$0]  %s54_s9, 1024, %s56_s12, [#allocation9], %s480_s10, %s480_s10, %s481_s0  }
   0xe   :  { %469 = dma.done.wait [#allocation3], 16  }
   0xf   :  { %470 = vsyncadd [#allocation3], 4294967280 }
  0x10   :  { %471 = dma.done.wait [#allocation6], 1040  }
  0x11   :  { %472 = vsyncadd [#allocation6], 4294966256 }
  0x12   :  { %473 = dma.done.wait [#allocation9], 1024  }
  0x13   :  { %474 = vsyncadd [#allocation9], 4294966272  ;;  %v340_v0 = vld [vmem:[#allocation8 + $0x38] sm:$0xff]  ;;  %v339_v2 = vld [vmem:[#allocation8 + $0x30] sm:$0xff]  ;;  %s483_s13 = smov [#allocation10]   ;;  %s249_s17 = sshll.u32 %s537_s5, 4  ;;  %s250_s17 = int_to_ptr.hbm [resolvable:$true] %s249_s17 }
  0x14   :  { %v332_v1 = vld [vmem:[#allocation7 + $0x38] sm:$0xff]  ;;  %162 = vmatpush.bf16.msra.mxu0 %v340_v0  ;;  %v331_v3 = vld [vmem:[#allocation7 + $0x30] sm:$0xff]  ;;  %v338_v4 = vld [vmem:[#allocation8 + $0x28] sm:$0xff]  ;;  %s247_s14 = sshll.u32 %s483_s13, 4  ;;  %s248_s14 = int_to_ptr.vmem [resolvable:$true] %s247_s14 }
  0x15   :  { %223 = vmatpush.bf16.msra.mxu1 %v332_v1  ;;  %v330_v5 = vld [vmem:[#allocation7 + $0x28] sm:$0xff]  ;;  %v337_v6 = vld [vmem:[#allocation8 + $0x20] sm:$0xff]  ;;  %v336_v8 = vld [vmem:[#allocation8 + $0x18] sm:$0xff] }
  0x16   :  { %v329_v7 = vld [vmem:[#allocation7 + $0x20] sm:$0xff]  ;;  %v328_v9 = vld [vmem:[#allocation7 + $0x18] sm:$0xff]  ;;  %v335_v10 = vld [vmem:[#allocation8 + $0x10] sm:$0xff] }
  0x17   :  { %v327_v11 = vld [vmem:[#allocation7 + $0x10] sm:$0xff]  ;;  %v334_v12 = vld [vmem:[#allocation8 + $0x8] sm:$0xff]  ;;  %v333_v14 = vld [vmem:[#allocation8] sm:$0xff] }
  0x18   :  { %163 = vmatpush.bf16.msra.mxu0 %v339_v2  ;;  %v326_v13 = vld [vmem:[#allocation7 + $0x8] sm:$0xff]  ;;  %v325_v15 = vld [vmem:[#allocation7] sm:$0xff]  ;;  %v97_v16 = vld [vmem:[#allocation5] sm:$0x1] }
  0x19   :  { %224 = vmatpush.bf16.msra.mxu1 %v331_v3  ;;  %v80_v17 = vld [vmem:[#allocation2] sm:$0x1] }
  0x1a   :  { %v348_v18 = vld [vmem:[%s536_s4] ss:$0 sm:$0xff] }
  0x1c   :  { %164 = vmatpush.bf16.msra.mxu0 %v338_v4 }
  0x1d   :  { %225 = vmatpush.bf16.msra.mxu1 %v330_v5 }
  0x20   :  { %165 = vmatpush.bf16.msra.mxu0 %v337_v6 }
  0x21   :  { %226 = vmatpush.bf16.msra.mxu1 %v329_v7 }
  0x24   :  { %166 = vmatpush.bf16.msra.mxu0 %v336_v8 }
  0x25   :  { %227 = vmatpush.bf16.msra.mxu1 %v328_v9 }
  0x28   :  { %167 = vmatpush.bf16.msra.mxu0 %v335_v10 }
  0x29   :  { %228 = vmatpush.bf16.msra.mxu1 %v327_v11 }
  0x2c   :  { %168 = vmatpush.bf16.msra.mxu0 %v334_v12 }
  0x2d   :  { %229 = vmatpush.bf16.msra.mxu1 %v326_v13 }
  0x30   :  { %169 = vmatpush.bf16.msra.mxu0 %v333_v14 }
  0x31   :  { %230 = vmatpush.bf16.msra.mxu1 %v325_v15 }
  0x33   :  { %170 = vmatmul.bf16.vlgmr.msra.gmra.mxu0 %v97_v16 }
  0x34   :  { %231 = vmatmul.bf16.vlgmr.msra.gmra.mxu1 %v80_v17 }
  0xb0   :  { %v171_v19 = vpop.f32.mrf.mxu0 }
  0xb1   :  { %v232_v20 = vpop.f32.mrf.mxu1 }
  0xb2   :  { %v233_v21 = vadd.f32 %v232_v20, %v171_v19 }
  0xb4   :  { %v240_v22 = vadd.f32 %v348_v18, %v233_v21 }
  0xb6   :  { %241 = vst [vmem:[#allocation10] sm:$0x3] %v240_v22 }
  0xb7   :  { %252 = dma.vmem_to_hbm [thread:$0]  %s248_s14, 32, %s250_s17, [#allocation4]  }
  0xb8   :  { %v173_v23 = vpop.f32.mrf.mxu0 }
  0xb9   :  { %v234_v24 = vpop.f32.mrf.mxu1 }
  0xba   :  { %475 = dma.done.wait [#allocation4], 32  }
  0xbb   :  { %476 = vsyncadd [#allocation4], 4294967264 }
  0xbc   :  { %257 = vsyncpa [#allocation3], 1 }
  0xbd   :  { %258 = vsyncpa [#allocation6], 1 }
  0xbe   :  { %259 = vsyncpa [#allocation9], 1 }
  0xbf   :  { %260 = vsyncpa [#allocation4], 1 }

</bundles_post_ra>
